<compile_context>
chip_gen: v6e
topology: v6e:2x2x1
jax: 0.10.0
libtpu: 0.0.40
codegen_flags: <defaults>
</compile_context>

<pallas_src>
import math

import jax
import jax.numpy as jnp
from jax.experimental import pallas as pl
from jax.experimental.pallas import tpu as pltpu


def _resolve_shape(shape, numel):
    """torch.view semantics: at most one -1, element count must match."""
    shape = list(shape)
    neg = [i for i, s in enumerate(shape) if s == -1]
    if len(neg) > 1:
        raise ValueError("only one dimension may be -1")
    if neg:
        known = 1
        for s in shape:
            if s != -1:
                known *= s
        if known == 0 or numel % known != 0:
            raise ValueError(f"cannot view {numel} elements as {tuple(shape)}")
        shape[neg[0]] = numel // known
    if math.prod(shape) != numel:
        raise ValueError(f"cannot view {numel} elements as {tuple(shape)}")
    return tuple(shape)


def _dma_copy_kernel(x_hbm, o_hbm, sem):
    # Single whole-array HBM -> HBM DMA: issue it, then block on completion.
    copy = pltpu.make_async_copy(x_hbm, o_hbm, sem)
    copy.start()
    copy.wait()


def pallas_reshape(x, shape):
    """Equivalent of torch `x.view(*shape)`."""
    out_shape = _resolve_shape(shape, x.size)

    # Copy the element stream once, HBM -> HBM, with no VMEM staging and no
    # padding/alignment requirements (input and output refs have identical
    # shape, so the DMA descriptor is a plain contiguous copy).
    copied = pl.pallas_call(
        _dma_copy_kernel,
        out_shape=jax.ShapeDtypeStruct(x.shape, x.dtype),
        in_specs=[pl.BlockSpec(memory_space=pl.ANY)],
        out_specs=pl.BlockSpec(memory_space=pl.ANY),
        scratch_shapes=[pltpu.SemaphoreType.DMA(())],
    )(x)

    # The reshape itself is a metadata-only XLA op on the contiguous copy.
    return copied.reshape(out_shape)


class Reshape:
    """Mirror of the PyTorch nn.Module: Reshape(shape)(x) == x.view(*shape)."""

    def __init__(self, shape):
        self.shape = tuple(shape)

    def __call__(self, x):
        return pallas_reshape(x, self.shape)


if __name__ == "__main__":
    key = jax.random.PRNGKey(0)
    x = jax.random.normal(key, (2, 4, 16, 16), jnp.float32)

    # (2, 4, 16, 16) -> (2, 64, 16), exactly like x.view(2, 64, 16)
    mod = Reshape((2, 64, 16))
    out = jax.block_until_ready(jax.jit(mod)(x))
    assert out.shape == (2, 64, 16), out.shape
    assert jnp.array_equal(out, x.reshape(2, 64, 16)), "reshape mismatch"

    # also exercise the -1 inference path, like x.view(2, -1)
    out2 = jax.block_until_ready(jax.jit(Reshape((2, -1)))(x))
    assert out2.shape == (2, 1024), out2.shape
    assert jnp.array_equal(out2, x.reshape(2, 1024)), "reshape(-1) mismatch"

    # odd element count (not a multiple of 128) also works — no padding path
    y = jax.random.normal(jax.random.PRNGKey(1), (3, 5, 7), jnp.float32)
    out3 = jax.block_until_ready(jax.jit(Reshape((105,)))(y))
    assert out3.shape == (105,), out3.shape
    assert jnp.array_equal(out3, y.reshape(105)), "odd-size reshape mismatch"

    assert jnp.all(jnp.isfinite(out))
    print("KERNEL_OK")
</pallas_src>

<mosaic_0001>
module attributes {stable_mosaic.version = 11 : i64} {
  func.func @_dma_copy_kernel(%arg0: memref<2x4x16x16xf32, #tpu.memory_space<any>>, %arg1: memref<2x4x16x16xf32, #tpu.memory_space<any>>, %arg2: memref<!tpu.dma_semaphore, #tpu.memory_space<semaphore_mem>>) attributes {dimension_semantics = [], scalar_prefetch = 0 : i64, scratch_operands = 1 : i64, tpu.core_type = #tpu.core_type<tc>} {
    tpu.enqueue_dma source(%arg0 : memref<2x4x16x16xf32, #tpu.memory_space<any>>) target(%arg1 : memref<2x4x16x16xf32, #tpu.memory_space<any>>) target_semaphore(%arg2 : memref<!tpu.dma_semaphore, #tpu.memory_space<semaphore_mem>>)
    tpu.wait_dma2 semaphore(%arg2 : memref<!tpu.dma_semaphore, #tpu.memory_space<semaphore_mem>>) src(%arg0 : memref<2x4x16x16xf32, #tpu.memory_space<any>>) dst(%arg1 : memref<2x4x16x16xf32, #tpu.memory_space<any>>)
    return
  }
}

</mosaic_0001>

<bundles_post_ra>
// kernel: _unnamed_function_.1
= control target key start
LH: loop header
LB: loop body
LE: loop exit
PB: predicated region body
PF: predicated region fallthrough
CT: control target
= control target key end

     0   :  { %s67_s0 = inlined_call_operand.hbm [shape: f32[2,4,16,16], index: 0, kind: input, shape index: {}]   ;;  %s68_s1 = inlined_call_operand.vmem [shape: f32[2,4,16,16], index: 1, kind: output, shape index: {}]  }
   0x1   :  { %s13_s8 = sshll.u32 %s68_s1, 4  ;;  %s14_s8 = int_to_ptr.vmem [resolvable:$true] %s13_s8 }
   0x2   :  { %s37_s9 = scalar_lea.vmem %s14_s8, 2048  ;;  %p42_p1 = scmp.lt.s32.totalorder %s14_s8, %s14_s8 }
   0x3   :  { %p38_p0 = scmp.ne.s32.totalorder %s14_s8, %s37_s9  ;;  %p43_p2 = scmp.lt.s32.totalorder %s37_s9, %s37_s9 }
   0x5   :  { %p44_p3 = por %p43_p2, %p42_p1 }
   0x7   :  { %p45_p4 = pnand %p44_p3, %p38_p0 }
   0x9   :  { %48 = shalt.err (!%p45_p4)  }
   0xa   :  { %16 = dma.hbm_to_vmem [thread:$0]  %s67_s0, 2048, %s14_s8, [#allocation2] }
   0xb   :  { %49 = dma.done.wait [#allocation2], 2048 }
   0xc   :  { %50 = vsyncadd [#allocation2], 4294965248 }
   0xd   :  { %22 = vsyncmov [#allocation2] }
  0x10   :  { %s23_s12 = vpop.sfrf %22 }
  0x11   :  { %p28_p5 = scmp.ne.s32.totalorder %s23_s12, 0 }
  0x13   :  { %27 = shalt.err (%p28_p5)  }

</bundles_post_ra>
